<compile_context>
chip_gen: v5e
topology: v5e:2x2
jax: 0.10.0
libtpu: 0.0.40
codegen_flags: <defaults>
</compile_context>

<pallas_src>
import functools

import jax
import jax.numpy as jnp
from jax.experimental import pallas as pl
from jax.experimental.pallas import tpu as pltpu


def _linear_bn_kernel(x_ref, w_ref, b_ref, o_ref):
    # x_ref: (1, C_in, thw)   activation slab, lanes = spatial positions
    # w_ref: (C_out, C_in)    1x1 conv weight with BN scale pre-folded
    # b_ref: (C_out, 1)       folded BN bias (f32)
    # o_ref: (1, C_out, thw)  lane-dense output slab
    acc = jnp.dot(w_ref[...], x_ref[0],
                  preferred_element_type=jnp.float32)        # (C_out, thw) f32
    o_ref[0] = (acc + b_ref[...]).astype(o_ref.dtype)


def _pick_spatial_tile(hw, c_in, c_out, itemsize,
                       vmem_budget_bytes=16 * 1024 * 1024):
    """Largest lane tile keeping double-buffered in/out blocks within budget."""
    max_thw = vmem_budget_bytes // (2 * (c_in + c_out) * itemsize)
    max_thw = max(128, (max_thw // 128) * 128)
    if hw <= max_thw:
        return hw, hw                        # full-extent block, no padding
    thw = max_thw                            # multiple of 128
    hw_pad = pl.cdiv(hw, thw) * thw
    return thw, hw_pad


@functools.partial(jax.jit, static_argnames=("compute_dtype", "out_dtype"))
def linear_block_forward(x_nchw, conv_w, bn_gamma, bn_beta, bn_mean, bn_var,
                         eps=1e-5, *, compute_dtype=jnp.bfloat16,
                         out_dtype=None):
    """Fused 1x1 conv (bias=False) + BatchNorm2d (eval mode) on NCHW input."""
    n, c_in, h, w = x_nchw.shape
    c_out = conv_w.shape[0]
    if out_dtype is None:
        out_dtype = x_nchw.dtype

    # ---- Fold BN (running stats) into per-channel scale/bias (f32 math). ----
    inv_std = jax.lax.rsqrt(bn_var.astype(jnp.float32) + eps)
    scale = bn_gamma.astype(jnp.float32) * inv_std                   # (C_out,)
    bias = bn_beta.astype(jnp.float32) - bn_mean.astype(jnp.float32) * scale
    w2d = conv_w.reshape(c_out, c_in).astype(jnp.float32)
    w_folded = (w2d * scale[:, None]).astype(compute_dtype)          # (C_out,C_in)
    bias2d = bias.reshape(c_out, 1)                                  # f32

    # ---- NCHW -> (N, C_in, H*W): a free reshape, no transpose needed. ----
    hw = h * w
    x3 = x_nchw.reshape(n, c_in, hw).astype(compute_dtype)

    thw, hw_pad = _pick_spatial_tile(hw, c_in, c_out,
                                     jnp.dtype(compute_dtype).itemsize)
    if hw_pad != hw:
        x3 = jnp.pad(x3, ((0, 0), (0, 0), (0, hw_pad - hw)))

    grid = (n, hw_pad // thw)
    out3 = pl.pallas_call(
        _linear_bn_kernel,
        out_shape=jax.ShapeDtypeStruct((n, c_out, hw_pad), out_dtype),
        grid_spec=pltpu.PrefetchScalarGridSpec(
            num_scalar_prefetch=0,
            grid=grid,
            in_specs=[
                pl.BlockSpec((1, c_in, thw), lambda b, j: (b, 0, j)),
                pl.BlockSpec((c_out, c_in), lambda b, j: (0, 0)),
                pl.BlockSpec((c_out, 1), lambda b, j: (0, 0)),
            ],
            out_specs=pl.BlockSpec((1, c_out, thw), lambda b, j: (b, 0, j)),
        ),
        compiler_params=pltpu.CompilerParams(
            dimension_semantics=("parallel", "parallel"),
            vmem_limit_bytes=48 * 1024 * 1024),
    )(x3, w_folded, bias2d)

    if hw_pad != hw:
        out3 = out3[:, :, :hw]
    return out3.reshape(n, c_out, h, w)


def _reference(x_nchw, conv_w, bn_gamma, bn_beta, bn_mean, bn_var, eps=1e-5):
    # Pure-JAX f32 reference of the PyTorch module (eval-mode BN).
    c_out, c_in = conv_w.shape[0], conv_w.shape[1]
    w2d = conv_w.reshape(c_out, c_in)
    y = jnp.einsum("nchw,oc->nohw", x_nchw, w2d)
    scale = bn_gamma / jnp.sqrt(bn_var + eps)
    bias = bn_beta - bn_mean * scale
    return y * scale[None, :, None, None] + bias[None, :, None, None]


if __name__ == "__main__":
    key = jax.random.PRNGKey(0)
    k_x, k_w, k_g, k_b, k_m, k_v = jax.random.split(key, 6)

    # Small shapes consistent with the module: batch=2, in_c=4, out_c=8, 16x16.
    N, C_IN, C_OUT, H, W = 2, 4, 8, 16, 16

    x = jax.random.normal(k_x, (N, C_IN, H, W), dtype=jnp.float32)
    conv_w = jax.random.normal(k_w, (C_OUT, C_IN, 1, 1), dtype=jnp.float32) * 0.1
    bn_gamma = 1.0 + 0.1 * jax.random.normal(k_g, (C_OUT,), dtype=jnp.float32)
    bn_beta = 0.1 * jax.random.normal(k_b, (C_OUT,), dtype=jnp.float32)
    bn_mean = 0.1 * jax.random.normal(k_m, (C_OUT,), dtype=jnp.float32)
    bn_var = jnp.abs(jax.random.normal(k_v, (C_OUT,), dtype=jnp.float32)) + 0.5

    ref = _reference(x, conv_w, bn_gamma, bn_beta, bn_mean, bn_var)

    # 1) f32 path — exact semantics of the PyTorch module (tight tolerance).
    out_f32 = linear_block_forward(x, conv_w, bn_gamma, bn_beta, bn_mean,
                                   bn_var, compute_dtype=jnp.float32)
    out_f32 = jax.block_until_ready(out_f32)
    assert out_f32.shape == (N, C_OUT, H, W), out_f32.shape
    assert jnp.allclose(out_f32, ref, atol=1e-4, rtol=1e-4), float(
        jnp.max(jnp.abs(out_f32 - ref)))

    # 2) bf16 I/O perf config (f32 accumulation) — bf16-appropriate tolerance.
    out_bf16 = linear_block_forward(x.astype(jnp.bfloat16), conv_w, bn_gamma,
                                    bn_beta, bn_mean, bn_var,
                                    compute_dtype=jnp.bfloat16,
                                    out_dtype=jnp.float32)
    out_bf16 = jax.block_until_ready(out_bf16)
    assert out_bf16.shape == (N, C_OUT, H, W), out_bf16.shape
    assert jnp.allclose(out_bf16, ref, atol=2e-2, rtol=2e-2), float(
        jnp.max(jnp.abs(out_bf16 - ref)))

    print("KERNEL_OK")
</pallas_src>

<mosaic_0001>
module attributes {stable_mosaic.version = 11 : i64} {
  func.func @_linear_bn_kernel(%arg0: i32, %arg1: i32, %arg2: memref<1x4x256xf32, #tpu.memory_space<vmem>>, %arg3: memref<8x4xf32, #tpu.memory_space<vmem>>, %arg4: memref<8x1xf32, #tpu.memory_space<vmem>>, %arg5: memref<1x8x256xf32, #tpu.memory_space<vmem>>) attributes {dimension_semantics = [#tpu.dimension_semantics<parallel>, #tpu.dimension_semantics<parallel>], iteration_bounds = array<i64: 2, 1>, scalar_prefetch = 0 : i64, scratch_operands = 0 : i64, tpu.core_type = #tpu.core_type<tc>, window_params = [{transform_indices = @transform_0, window_bounds = array<i64: 1, 4, 256>}, {pipeline_mode = #tpu.pipeline_mode<synchronous>, transform_indices = @transform_1, window_bounds = array<i64: 8, 4>}, {pipeline_mode = #tpu.pipeline_mode<synchronous>, transform_indices = @transform_2, window_bounds = array<i64: 8, 1>}, {transform_indices = @transform_3, window_bounds = array<i64: 1, 8, 256>}]} {
    %c0 = arith.constant 0 : index
    %c0_0 = arith.constant 0 : index
    %0 = vector.load %arg3[%c0, %c0_0] : memref<8x4xf32, #tpu.memory_space<vmem>>, vector<8x4xf32>
    %c0_1 = arith.constant 0 : index
    %c0_2 = arith.constant 0 : index
    %c0_3 = arith.constant 0 : index
    %1 = vector.load %arg2[%c0_1, %c0_2, %c0_3] : memref<1x4x256xf32, #tpu.memory_space<vmem>>, vector<1x4x256xf32>
    %2 = vector.shape_cast %1 : vector<1x4x256xf32> to vector<4x256xf32>
    %cst = arith.constant dense<0.000000e+00> : vector<8x256xf32>
    %3 = tpu.matmul %0, %2, %cst {dimension_numbers = #tpu.dot_dimension_numbers<[1], [0], [0], [1], [0, 0, 1, 1], [], []>} : vector<8x4xf32>, vector<4x256xf32>, vector<8x256xf32> -> vector<8x256xf32>
    %c0_4 = arith.constant 0 : index
    %c0_5 = arith.constant 0 : index
    %4 = vector.load %arg4[%c0_4, %c0_5] : memref<8x1xf32, #tpu.memory_space<vmem>>, vector<8x1xf32>
    %5 = vector.broadcast %4 : vector<8x1xf32> to vector<8x256xf32>
    %6 = arith.addf %3, %5 : vector<8x256xf32>
    %c0_6 = arith.constant 0 : index
    %c0_7 = arith.constant 0 : index
    %c0_8 = arith.constant 0 : index
    %7 = vector.load %arg5[%c0_6, %c0_7, %c0_8] : memref<1x8x256xf32, #tpu.memory_space<vmem>>, vector<1x8x256xf32>
    %8 = vector.shape_cast %7 : vector<1x8x256xf32> to vector<8x256xf32>
    %9 = vector.shape_cast %6 : vector<8x256xf32> to vector<1x8x256xf32>
    tpu.vector_store %arg5[%c0_6, %c0_7, %c0_8], %9 {strides = array<i32>} : memref<1x8x256xf32, #tpu.memory_space<vmem>>, vector<1x8x256xf32>,
    return
  }
  func.func @transform_0(%arg0: i32, %arg1: i32) -> (i32, i32, i32) {
    %c0_i32 = arith.constant 0 : i32
    %c0_i32_0 = arith.constant 0 : i32
    return %arg0, %c0_i32, %arg1 : i32, i32, i32
  }
  func.func @transform_1(%arg0: i32, %arg1: i32) -> (i32, i32) {
    %c0_i32 = arith.constant 0 : i32
    %c0_i32_0 = arith.constant 0 : i32
    %c0_i32_1 = arith.constant 0 : i32
    return %c0_i32, %c0_i32_0 : i32, i32
  }
  func.func @transform_2(%arg0: i32, %arg1: i32) -> (i32, i32) {
    %c0_i32 = arith.constant 0 : i32
    %c0_i32_0 = arith.constant 0 : i32
    %c0_i32_1 = arith.constant 0 : i32
    return %c0_i32, %c0_i32_0 : i32, i32
  }
  func.func @transform_3(%arg0: i32, %arg1: i32) -> (i32, i32, i32) {
    %c0_i32 = arith.constant 0 : i32
    %c0_i32_0 = arith.constant 0 : i32
    return %arg0, %c0_i32, %arg1 : i32, i32, i32
  }
}

</mosaic_0001>

<bundles_post_ra>
// kernel: linear_block_forward.1
= control target key start
LH: loop header
LB: loop body
LE: loop exit
PB: predicated region body
PF: predicated region fallthrough
CT: control target
= control target key end

     0   :  { %s448_s12 = smov 0   ;;  %s450_s13 = smov 0   ;;  %s487_s0 = inlined_call_operand.vmem [shape: f32[2,4,256], index: 0, kind: input, shape index: {}]   ;;  %s488_s1 = inlined_call_operand.vmem [shape: f32[8,4], index: 1, kind: input, shape index: {}]   ;;  %s489_s2 = inlined_call_operand.vmem [shape: f32[8,1], index: 2, kind: input, shape index: {}]   ;;  %s490_s3 = inlined_call_operand.vmem [shape: f32[2,8,256], index: 3, kind: output, shape index: {}]  }
   0x1   :  { %s452_s14 = smov 0  }
   0x2 LB: > { %s25_s15 = sadd.s32 1, %s421_s13  ;;  %p364_p0 = scmp.ge.s32.totalorder %s425_s14, 1  ;;  %s425_s14 = sphi %s452_s14, %s13_s14   ;;  %s421_s13 = sphi %s450_s13, %s492_s13   ;;  %s417_s12 = sphi %s448_s12, %s491_s12  }
   0x3   : > { %p27_p1 = scmp.ge.s32.totalorder %s25_s15, 2  ;;  %p158_p2 = scmp.lt.s32.totalorder %s425_s14, 3 }
   0x5   : > { %s494_s15 = smov (%p27_p1, %s25_s15), 0  ;;  %p159_p3 = pnand %p364_p0, %p158_p2 }
   0x6   : > { %p191_p4 = scmp.lt.s32.totalorder (!%p159_p3), %s417_s12, 1 }
   0x7   : > { %162 = sbr.rel (%p159_p3) target bundleno = 155 (0x9b), region = 32 }
   0xc   : > { %v212_v0 = vld [vmem:[%s489_s2] sm:$0xff]  ;;  %v427_v1 = vmov 0   ;;  %s496_s12 = smov (!%p191_p4, %s417_s12), 1  ;;  %vm226_vm0 = vcmask 1043456   ;;  %vm222_vm1 = vcmask 31744  }
   0xd   : > { %402 = vset.pattern.permute.xlu0 %v427_v1  ;;  %s375_s18 = sshll.u32 %s496_s12, 3  ;;  %v210_v3 = vld [vmem:[%s488_s1] sm:$0xff]  ;;  %s376_s24 = sshll.u32 %s496_s12, 4 }
   0xe   : > { %215 = vperm.xlu0 %402, %v212_v0   ;;  %s198_s21 = scalar_lea.vmem %s487_s0, %s375_s18  ;;  %s208_s27 = scalar_lea.vmem %s490_s3, %s376_s24 }
   0xf   : > { %v211_v2 = vld [vmem:[%s198_s21] sm:$0xff] }
  0x10   : > { %219 = vst [vmem:[#allocation1] ss:$2 sm:$0xff] %v211_v2 }
  0x17   : > { %v220_v4 = vld.sshfl [vmem:[#allocation1] sm:$0xff pattern:$0x75316420]  ;;  %v221_v5 = vld.sshfl [vmem:[#allocation1 + $0x8] sm:$0xff pattern:$0x75316420] }
  0x18   : > { %369 = vmatpush.msk.msra.mxu0 %vm226_vm0, %v220_v4  ;;  %371 = vmatpush.msk.msra.mxu1 %vm226_vm0, %v221_v5 }
  0x19   : > { %370 = vmatmul.msk.f32.vlgmr.msra.gmra.mxu0 %vm222_vm1, %v210_v3  ;;  %372 = vmatmul.msk.f32.vlgmr.msra.gmra.mxu1 %vm222_vm1, %v210_v3 }
  0x80   : > { %v216_v6 = vpop.permute.xlu0 %215 }
  0x96   : > { %v248_v7 = vpop.f32.mrf.mxu0  ;;  %v268_v8 = vpop.f32.mrf.mxu1 }
  0x97   : > { %v249_v9 = vadd.f32 %v248_v7, %v216_v6  ;;  %v269_v10 = vadd.f32 %v268_v8, %v216_v6 }
  0x99   : > { %271 = vst [vmem:[%s208_s27] sm:$0xff] %v249_v9 }
  0x9a   : > { %272 = vst [vmem:[%s208_s27 + $0x8] sm:$0xff] %v269_v10 }
  0x9b PF: > { %s13_s14 = sadd.s32 1, %s425_s14   ;;  %s491_s12 = smov %s421_s13 }
  0x9c   : > { %p10_p5 = scmp.ge.s32.totalorder %s13_s14, 4   ;;  %s492_s13 = smov %s494_s15 }
  0x9e   :  { %12 = sbr.rel (!%p10_p5) target bundleno = 2 (0x2), region = 62 }

</bundles_post_ra>
